<compile_context>
chip_gen: v7x
topology: tpu7x:2x2x1
jax: 0.10.0
libtpu: 0.0.40
codegen_flags: <defaults>
</compile_context>

<pallas_src>
import functools

import jax
import jax.numpy as jnp
from jax.experimental import pallas as pl
from jax.experimental.pallas import tpu as pltpu

_VMEM_LIMIT = 48 * 1024 * 1024
_TILE_M_TARGET = 512


def _round_up(x, m):
    return (x + m - 1) // m * m


def _pad_cols(a, c_to):
    c = a.shape[-1]
    return a if c == c_to else jnp.pad(a, ((0, 0), (0, c_to - c)))


# ----------------------------------------------------------------------------
# Pallas kernels
# ----------------------------------------------------------------------------
def _make_gemm_kernel(has_bias, relu):
    if has_bias:
        def kernel(p_ref, w_ref, b_ref, o_ref):
            acc = jnp.dot(p_ref[...], w_ref[...],
                          preferred_element_type=jnp.float32) + b_ref[...]
            if relu:
                acc = jnp.maximum(acc, 0.0)
            o_ref[...] = acc.astype(o_ref.dtype)
    else:
        def kernel(p_ref, w_ref, o_ref):
            acc = jnp.dot(p_ref[...], w_ref[...],
                          preferred_element_type=jnp.float32)
            if relu:
                acc = jnp.maximum(acc, 0.0)
            o_ref[...] = acc.astype(o_ref.dtype)
    return kernel


def fused_gemm(patches, w, bias=None, relu=False, out_dtype=jnp.float32,
               tile_m_target=_TILE_M_TARGET):
    """(M, K) @ (K, Cp) [+ bias] [-> relu], tiled over M, Cp a multiple of 128."""
    M, K = patches.shape
    Cp = w.shape[1]
    tile_m = min(tile_m_target, _round_up(M, 8))
    Mp = _round_up(M, tile_m)
    if Mp != M:
        patches = jnp.pad(patches, ((0, Mp - M), (0, 0)))

    in_specs = [pl.BlockSpec((tile_m, K), lambda i: (i, 0)),
                pl.BlockSpec((K, Cp), lambda i: (0, 0))]
    args = [patches, w]
    if bias is not None:
        in_specs.append(pl.BlockSpec((1, Cp), lambda i: (0, 0)))
        args.append(bias)

    out = pl.pallas_call(
        _make_gemm_kernel(bias is not None, relu),
        out_shape=jax.ShapeDtypeStruct((Mp, Cp), out_dtype),
        grid_spec=pltpu.PrefetchScalarGridSpec(
            num_scalar_prefetch=0,
            grid=(Mp // tile_m,),
            in_specs=in_specs,
            out_specs=pl.BlockSpec((tile_m, Cp), lambda i: (i, 0)),
        ),
        compiler_params=pltpu.CompilerParams(
            dimension_semantics=("parallel",), vmem_limit_bytes=_VMEM_LIMIT),
    )(*args)
    return out[:M]


def _bn_stats_kernel(y_ref, sum_ref, sq_ref):
    @pl.when(pl.program_id(0) == 0)
    def _():
        sum_ref[...] = jnp.zeros_like(sum_ref)
        sq_ref[...] = jnp.zeros_like(sq_ref)
    y = y_ref[...]
    sum_ref[...] += jnp.sum(y, axis=0, keepdims=True)
    sq_ref[...] += jnp.sum(y * y, axis=0, keepdims=True)


def bn_stats(y, tile_m_target=_TILE_M_TARGET):
    """Per-column sum and sum-of-squares of y (M, C), streamed in M tiles."""
    M, C = y.shape
    tile_m = min(tile_m_target, _round_up(M, 8))
    Mp = _round_up(M, tile_m)
    if Mp != M:
        y = jnp.pad(y, ((0, Mp - M), (0, 0)))   # zero rows add 0 to both sums
    return pl.pallas_call(
        _bn_stats_kernel,
        out_shape=(jax.ShapeDtypeStruct((1, C), jnp.float32),
                   jax.ShapeDtypeStruct((1, C), jnp.float32)),
        grid_spec=pltpu.PrefetchScalarGridSpec(
            num_scalar_prefetch=0,
            grid=(Mp // tile_m,),
            in_specs=[pl.BlockSpec((tile_m, C), lambda i: (i, 0))],
            out_specs=[pl.BlockSpec((1, C), lambda i: (0, 0)),
                       pl.BlockSpec((1, C), lambda i: (0, 0))],
        ),
        compiler_params=pltpu.CompilerParams(
            dimension_semantics=("arbitrary",), vmem_limit_bytes=_VMEM_LIMIT),
    )(y)


def _bn_affine_kernel(y_ref, s_ref, b_ref, o_ref):
    o_ref[...] = y_ref[...] * s_ref[...] + b_ref[...]


def bn_affine(y, scale, shift, tile_m_target=_TILE_M_TARGET):
    """y * scale + shift, per column, tiled over M."""
    M, C = y.shape
    tile_m = min(tile_m_target, _round_up(M, 8))
    Mp = _round_up(M, tile_m)
    if Mp != M:
        y = jnp.pad(y, ((0, Mp - M), (0, 0)))
    out = pl.pallas_call(
        _bn_affine_kernel,
        out_shape=jax.ShapeDtypeStruct((Mp, C), jnp.float32),
        grid_spec=pltpu.PrefetchScalarGridSpec(
            num_scalar_prefetch=0,
            grid=(Mp // tile_m,),
            in_specs=[pl.BlockSpec((tile_m, C), lambda i: (i, 0)),
                      pl.BlockSpec((1, C), lambda i: (0, 0)),
                      pl.BlockSpec((1, C), lambda i: (0, 0))],
            out_specs=pl.BlockSpec((tile_m, C), lambda i: (i, 0)),
        ),
        compiler_params=pltpu.CompilerParams(
            dimension_semantics=("parallel",), vmem_limit_bytes=_VMEM_LIMIT),
    )(y, scale.astype(jnp.float32), shift.astype(jnp.float32))
    return out[:M]


# ----------------------------------------------------------------------------
# Glue: im2col (NHWC, tap-major columns) and up-conv phase weight construction
# ----------------------------------------------------------------------------
def im2col_nhwc(x, k, s, pad):
    """x: (N, H, W, C) -> (N*Ho*Wo, k*k*C), column order (kh, kw, c)."""
    N, H, W, C = x.shape
    xp = jnp.pad(x, ((0, 0), (pad, pad), (pad, pad), (0, 0)))
    Ho = (H + 2 * pad - k) // s + 1
    Wo = (W + 2 * pad - k) // s + 1
    cols = []
    for kh in range(k):
        for kw in range(k):
            cols.append(xp[:, kh:kh + s * Ho:s, kw:kw + s * Wo:s, :])   # (N,Ho,Wo,C)
    patches = jnp.stack(cols, axis=3)                                    # (N,Ho,Wo,k*k,C)
    return patches.reshape(N * Ho * Wo, k * k * C), Ho, Wo


# ConvTranspose2d(k4, s2, p1): output (2q+p) takes input offsets dy and kernel taps kh:
#   phase 0 (even): (dy=-1, kh=3), (dy=0, kh=1);  phase 1 (odd): (dy=0, kh=2), (dy=+1, kh=0)
_PHASE_TAPS = (((0, 3), (1, 1)),   # phase 0: (dy index into {-1,0,+1}, kernel tap)
               ((1, 2), (2, 0)))   # phase 1


def build_up_weight(w_up):
    """w_up (inner, outer, 4, 4) -> (9*inner, 4*outer), rows (dy,dx,ci), cols (py,px,co)."""
    inner, outer = w_up.shape[0], w_up.shape[1]
    wb = jnp.zeros((3, 3, inner, 2, 2, outer), w_up.dtype)
    for py, taps_y in enumerate(_PHASE_TAPS):
        for px, taps_x in enumerate(_PHASE_TAPS):
            for dyi, kh in taps_y:
                for dxi, kw in taps_x:
                    wb = wb.at[dyi, dxi, :, py, px, :].set(w_up[:, :, kh, kw])
    return wb.reshape(9 * inner, 4 * outer)


# ----------------------------------------------------------------------------
# UNetSkipConnectionBlock forward (innermost)
# ----------------------------------------------------------------------------
def unet_skip_block_forward(x, params):
    w_down, b_down, w_up, b_up, gamma, beta = params
    del b_up  # cancelled exactly by the training-mode BatchNorm mean subtraction
    N, Cin, H, W = x.shape
    inner_nc = w_down.shape[0]
    outer_nc = w_up.shape[1]

    # ---- down: LeakyReLU(0.2) pre-im2col + Conv2d(k4,s2,p1) with fused bias + ReLU ----
    x_nhwc = jnp.transpose(x, (0, 2, 3, 1))
    x_act = jnp.where(x_nhwc >= 0, x_nhwc, 0.2 * x_nhwc)          # applied pre-duplication
    patches1, H2, W2 = im2col_nhwc(x_act, k=4, s=2, pad=1)        # (M1, 16*Cin)
    K1 = patches1.shape[1]
    Cp1 = _round_up(inner_nc, 128)
    w1 = _pad_cols(jnp.transpose(w_down, (2, 3, 1, 0)).reshape(K1, inner_nc),
                   Cp1).astype(jnp.bfloat16)
    b1 = _pad_cols(b_down.reshape(1, inner_nc), Cp1).astype(jnp.float32)
    # uprelu (ReLU on the down-conv output) is fused into the GEMM epilogue.
    d = fused_gemm(patches1.astype(jnp.bfloat16), w1, bias=b1, relu=True,
                   out_dtype=jnp.bfloat16)
    d = d[:, :inner_nc].reshape(N, H2, W2, inner_nc)

    # ---- up: ConvTranspose2d(k4,s2,p1) via 4-phase sub-pixel decomposition ----
    # One k=3/s=1/p=1 im2col of d is shared by all 4 output phases; no zero-dilation.
    patches2, _, _ = im2col_nhwc(d, k=3, s=1, pad=1)              # (M2, 9*inner)
    Cup = 4 * outer_nc
    Cp2 = _round_up(Cup, 128)
    w2 = _pad_cols(build_up_weight(w_up), Cp2).astype(jnp.bfloat16)
    y = fused_gemm(patches2.astype(jnp.bfloat16), w2, bias=None, relu=False,
                   out_dtype=jnp.float32)                         # (M2, Cp2)

    # ---- BatchNorm2d(outer_nc): training-mode batch stats, biased var, eps=1e-5 ----
    sums, sqs = bn_stats(y)                                       # (1, Cp2) each
    count = jnp.float32(N * H * W)                                # = M2 * 4 phases
    ch_sum = sums[0, :Cup].reshape(4, outer_nc).sum(axis=0)
    ch_sq = sqs[0, :Cup].reshape(4, outer_nc).sum(axis=0)
    mean = ch_sum / count
    var = ch_sq / count - mean * mean
    inv = jax.lax.rsqrt(var + 1e-5)
    scale_c = gamma * inv
    shift_c = beta - mean * scale_c
    scale_col = _pad_cols(jnp.broadcast_to(scale_c, (4, outer_nc)).reshape(1, Cup), Cp2)
    shift_col = _pad_cols(jnp.broadcast_to(shift_c, (4, outer_nc)).reshape(1, Cup), Cp2)
    yn = bn_affine(y, scale_col, shift_col)                       # (M2, Cp2)

    # ---- de-interleave phases -> NHWC -> NCHW; F.pad is a no-op (exact size restored) ----
    M2 = N * H2 * W2
    yn = yn[:M2, :Cup].reshape(N, H2, W2, 2, 2, outer_nc)
    yn = yn.transpose(0, 1, 3, 2, 4, 5).reshape(N, 2 * H2, 2 * W2, outer_nc)
    y_nchw = jnp.transpose(yn, (0, 3, 1, 2)).astype(x.dtype)

    # ---- skip connection: torch.cat([x, y], dim=1) ----
    return jnp.concatenate([x, y_nchw], axis=1)


# Pure-JAX reference (XLA convs, f32) for a sanity check.
def reference_forward(x, params):
    w_down, b_down, w_up, b_up, gamma, beta = params
    lr = jnp.where(x >= 0.0, x, 0.2 * x)
    d = jax.lax.conv_general_dilated(
        lr, w_down, (2, 2), ((1, 1), (1, 1)),
        dimension_numbers=("NCHW", "OIHW", "NCHW")) + b_down[None, :, None, None]
    r = jnp.maximum(d, 0.0)
    w_conv = jnp.flip(w_up, axis=(2, 3)).transpose(1, 0, 2, 3)
    y = jax.lax.conv_general_dilated(
        r, w_conv, (1, 1), ((2, 2), (2, 2)), lhs_dilation=(2, 2),
        dimension_numbers=("NCHW", "OIHW", "NCHW")) + b_up[None, :, None, None]
    mean = y.mean(axis=(0, 2, 3), keepdims=True)
    var = ((y - mean) ** 2).mean(axis=(0, 2, 3), keepdims=True)
    ybn = (y - mean) * jax.lax.rsqrt(var + 1e-5) * gamma[None, :, None, None] \
          + beta[None, :, None, None]
    return jnp.concatenate([x, ybn], axis=1)


if __name__ == "__main__":
    key = jax.random.PRNGKey(0)
    k_x, k_wd, k_bd, k_wu, k_bu, k_g, k_b = jax.random.split(key, 7)

    N, input_nc, H, W = 2, 4, 16, 16
    outer_nc, inner_nc = 4, 8

    x = jax.random.normal(k_x, (N, input_nc, H, W), jnp.float32)
    w_down = 0.05 * jax.random.normal(k_wd, (inner_nc, input_nc, 4, 4), jnp.float32)
    b_down = 0.05 * jax.random.normal(k_bd, (inner_nc,), jnp.float32)
    w_up = 0.05 * jax.random.normal(k_wu, (inner_nc, outer_nc, 4, 4), jnp.float32)
    b_up = 0.05 * jax.random.normal(k_bu, (outer_nc,), jnp.float32)
    gamma = 1.0 + 0.1 * jax.random.normal(k_g, (outer_nc,), jnp.float32)
    beta = 0.1 * jax.random.normal(k_b, (outer_nc,), jnp.float32)
    params = (w_down, b_down, w_up, b_up, gamma, beta)

    out = jax.block_until_ready(jax.jit(unet_skip_block_forward)(x, params))
    ref = jax.block_until_ready(reference_forward(x, params))

    assert out.shape == (N, input_nc + outer_nc, H, W), out.shape
    # bf16 MXU operands (f32 accumulation) -> slightly relaxed tolerance vs the f32 reference.
    assert jnp.allclose(out, ref, rtol=5e-2, atol=5e-2), float(jnp.abs(out - ref).max())

    # TODO(synk): outermost / middle variants (submodule recursion, Dropout(0.5)) are
    # configuration branches not exercised by this innermost block instantiation.
    print("KERNEL_OK")
</pallas_src>

<mosaic_0001>
module attributes {stable_mosaic.version = 11 : i64} {
  func.func @kernel(%arg0: i32, %arg1: memref<128x64xbf16, #tpu.memory_space<vmem>>, %arg2: memref<64x128xbf16, #tpu.memory_space<vmem>>, %arg3: memref<1x128xf32, #tpu.memory_space<vmem>>, %arg4: memref<128x128xbf16, #tpu.memory_space<vmem>>) attributes {dimension_semantics = [#tpu.dimension_semantics<parallel>], iteration_bounds = array<i64: 1>, scalar_prefetch = 0 : i64, scratch_operands = 0 : i64, tpu.core_type = #tpu.core_type<tc>, window_params = [{transform_indices = @transform_0, window_bounds = array<i64: 128, 64>}, {pipeline_mode = #tpu.pipeline_mode<synchronous>, transform_indices = @transform_1, window_bounds = array<i64: 64, 128>}, {pipeline_mode = #tpu.pipeline_mode<synchronous>, transform_indices = @transform_2, window_bounds = array<i64: 1, 128>}, {transform_indices = @transform_3, window_bounds = array<i64: 128, 128>}]} {
    %c0 = arith.constant 0 : index
    %c0_0 = arith.constant 0 : index
    %0 = vector.load %arg1[%c0, %c0_0] : memref<128x64xbf16, #tpu.memory_space<vmem>>, vector<128x64xbf16>
    %c0_1 = arith.constant 0 : index
    %c0_2 = arith.constant 0 : index
    %1 = vector.load %arg2[%c0_1, %c0_2] : memref<64x128xbf16, #tpu.memory_space<vmem>>, vector<64x128xbf16>
    %cst = arith.constant dense<0.000000e+00> : vector<128x128xf32>
    %2 = tpu.matmul %0, %1, %cst {dimension_numbers = #tpu.dot_dimension_numbers<[1], [0], [0], [1], [0, 0, 1, 1], [], []>} : vector<128x64xbf16>, vector<64x128xbf16>, vector<128x128xf32> -> vector<128x128xf32>
    %c0_3 = arith.constant 0 : index
    %c0_4 = arith.constant 0 : index
    %3 = vector.load %arg3[%c0_3, %c0_4] : memref<1x128xf32, #tpu.memory_space<vmem>>, vector<1x128xf32>
    %4 = vector.broadcast %3 : vector<1x128xf32> to vector<128x128xf32>
    %5 = arith.addf %2, %4 : vector<128x128xf32>
    %cst_5 = arith.constant 0.000000e+00 : f32
    %6 = vector.broadcast %cst_5 : f32 to vector<128x128xf32>
    %7 = arith.maximumf %5, %6 : vector<128x128xf32>
    %8 = arith.truncf %7 : vector<128x128xf32> to vector<128x128xbf16>
    %c0_6 = arith.constant 0 : index
    %c0_7 = arith.constant 0 : index
    %9 = vector.load %arg4[%c0_6, %c0_7] : memref<128x128xbf16, #tpu.memory_space<vmem>>, vector<128x128xbf16>
    tpu.vector_store %arg4[%c0_6, %c0_7], %8 {strides = array<i32>} : memref<128x128xbf16, #tpu.memory_space<vmem>>, vector<128x128xbf16>,
    return
  }
  func.func @transform_0(%arg0: i32) -> (i32, i32) {
    %c0_i32 = arith.constant 0 : i32
    %c0_i32_0 = arith.constant 0 : i32
    return %arg0, %c0_i32 : i32, i32
  }
  func.func @transform_1(%arg0: i32) -> (i32, i32) {
    %c0_i32 = arith.constant 0 : i32
    %c0_i32_0 = arith.constant 0 : i32
    %c0_i32_1 = arith.constant 0 : i32
    return %c0_i32, %c0_i32_0 : i32, i32
  }
  func.func @transform_2(%arg0: i32) -> (i32, i32) {
    %c0_i32 = arith.constant 0 : i32
    %c0_i32_0 = arith.constant 0 : i32
    %c0_i32_1 = arith.constant 0 : i32
    return %c0_i32, %c0_i32_0 : i32, i32
  }
  func.func @transform_3(%arg0: i32) -> (i32, i32) {
    %c0_i32 = arith.constant 0 : i32
    %c0_i32_0 = arith.constant 0 : i32
    return %arg0, %c0_i32 : i32, i32
  }
}

module attributes {stable_mosaic.version = 11 : i64} {
  func.func @kernel(%arg0: i32, %arg1: memref<128x72xbf16, #tpu.memory_space<vmem>>, %arg2: memref<72x128xbf16, #tpu.memory_space<vmem>>, %arg3: memref<128x128xf32, #tpu.memory_space<vmem>>) attributes {dimension_semantics = [#tpu.dimension_semantics<parallel>], iteration_bounds = array<i64: 1>, scalar_prefetch = 0 : i64, scratch_operands = 0 : i64, tpu.core_type = #tpu.core_type<tc>, window_params = [{transform_indices = @transform_0, window_bounds = array<i64: 128, 72>}, {pipeline_mode = #tpu.pipeline_mode<synchronous>, transform_indices = @transform_1, window_bounds = array<i64: 72, 128>}, {transform_indices = @transform_2, window_bounds = array<i64: 128, 128>}]} {
    %c0 = arith.constant 0 : index
    %c0_0 = arith.constant 0 : index
    %0 = vector.load %arg1[%c0, %c0_0] : memref<128x72xbf16, #tpu.memory_space<vmem>>, vector<128x72xbf16>
    %c0_1 = arith.constant 0 : index
    %c0_2 = arith.constant 0 : index
    %1 = vector.load %arg2[%c0_1, %c0_2] : memref<72x128xbf16, #tpu.memory_space<vmem>>, vector<72x128xbf16>
    %cst = arith.constant dense<0.000000e+00> : vector<128x128xf32>
    %2 = tpu.matmul %0, %1, %cst {dimension_numbers = #tpu.dot_dimension_numbers<[1], [0], [0], [1], [0, 0, 1, 1], [], []>} : vector<128x72xbf16>, vector<72x128xbf16>, vector<128x128xf32> -> vector<128x128xf32>
    %c0_3 = arith.constant 0 : index
    %c0_4 = arith.constant 0 : index
    %3 = vector.load %arg3[%c0_3, %c0_4] : memref<128x128xf32, #tpu.memory_space<vmem>>, vector<128x128xf32>
    tpu.vector_store %arg3[%c0_3, %c0_4], %2 {strides = array<i32>} : memref<128x128xf32, #tpu.memory_space<vmem>>, vector<128x128xf32>,
    return
  }
  func.func @transform_0(%arg0: i32) -> (i32, i32) {
    %c0_i32 = arith.constant 0 : i32
    %c0_i32_0 = arith.constant 0 : i32
    return %arg0, %c0_i32 : i32, i32
  }
  func.func @transform_1(%arg0: i32) -> (i32, i32) {
    %c0_i32 = arith.constant 0 : i32
    %c0_i32_0 = arith.constant 0 : i32
    %c0_i32_1 = arith.constant 0 : i32
    return %c0_i32, %c0_i32_0 : i32, i32
  }
  func.func @transform_2(%arg0: i32) -> (i32, i32) {
    %c0_i32 = arith.constant 0 : i32
    %c0_i32_0 = arith.constant 0 : i32
    return %arg0, %c0_i32 : i32, i32
  }
}

module attributes {stable_mosaic.version = 11 : i64} {
  func.func @_bn_stats_kernel(%arg0: i32, %arg1: memref<128x128xf32, #tpu.memory_space<vmem>>, %arg2: memref<1x128xf32, #tpu.memory_space<vmem>>, %arg3: memref<1x128xf32, #tpu.memory_space<vmem>>) attributes {dimension_semantics = [#tpu.dimension_semantics<arbitrary>], iteration_bounds = array<i64: 1>, scalar_prefetch = 0 : i64, scratch_operands = 0 : i64, tpu.core_type = #tpu.core_type<tc>, window_params = [{transform_indices = @transform_0, window_bounds = array<i64: 128, 128>}, {pipeline_mode = #tpu.pipeline_mode<synchronous>, transform_indices = @transform_1, window_bounds = array<i64: 1, 128>}, {pipeline_mode = #tpu.pipeline_mode<synchronous>, transform_indices = @transform_2, window_bounds = array<i64: 1, 128>}]} {
    %c0_i32 = arith.constant 0 : i32
    %0 = arith.cmpi eq, %arg0, %c0_i32 : i32
    %1 = arith.extui %0 : i1 to i32
    %c0_i32_0 = arith.constant 0 : i32
    %2 = arith.cmpi ne, %1, %c0_i32_0 : i32
    scf.if %2 {
      %cst_11 = arith.constant 0.000000e+00 : f32
      %15 = vector.broadcast %cst_11 : f32 to vector<1x128xf32>
      %c0_12 = arith.constant 0 : index
      %c0_13 = arith.constant 0 : index
      %16 = vector.load %arg2[%c0_12, %c0_13] : memref<1x128xf32, #tpu.memory_space<vmem>>, vector<1x128xf32>
      tpu.vector_store %arg2[%c0_12, %c0_13], %15 {strides = array<i32>} : memref<1x128xf32, #tpu.memory_space<vmem>>, vector<1x128xf32>,
      %cst_14 = arith.constant 0.000000e+00 : f32
      %17 = vector.broadcast %cst_14 : f32 to vector<1x128xf32>
      %c0_15 = arith.constant 0 : index
      %c0_16 = arith.constant 0 : index
      %18 = vector.load %arg3[%c0_15, %c0_16] : memref<1x128xf32, #tpu.memory_space<vmem>>, vector<1x128xf32>
      tpu.vector_store %arg3[%c0_15, %c0_16], %17 {strides = array<i32>} : memref<1x128xf32, #tpu.memory_space<vmem>>, vector<1x128xf32>,
    } else {
    }
    %c0 = arith.constant 0 : index
    %c0_1 = arith.constant 0 : index
    %3 = vector.load %arg1[%c0, %c0_1] : memref<128x128xf32, #tpu.memory_space<vmem>>, vector<128x128xf32>
    %c0_2 = arith.constant 0 : index
    %c0_3 = arith.constant 0 : index
    %4 = vector.load %arg2[%c0_2, %c0_3] : memref<1x128xf32, #tpu.memory_space<vmem>>, vector<1x128xf32>
    %cst = arith.constant dense<0.000000e+00> : vector<128xf32>
    %5 = vector.multi_reduction <add>, %3, %cst [0] : vector<128x128xf32> to vector<128xf32>
    %6 = vector.shape_cast %5 : vector<128xf32> to vector<1x128xf32>
    %7 = arith.addf %4, %6 : vector<1x128xf32>
    %c0_4 = arith.constant 0 : index
    %c0_5 = arith.constant 0 : index
    %8 = vector.load %arg2[%c0_4, %c0_5] : memref<1x128xf32, #tpu.memory_space<vmem>>, vector<1x128xf32>
    tpu.vector_store %arg2[%c0_4, %c0_5], %7 {strides = array<i32>} : memref<1x128xf32, #tpu.memory_space<vmem>>, vector<1x128xf32>,
    %c0_6 = arith.constant 0 : index
    %c0_7 = arith.constant 0 : index
    %9 = vector.load %arg3[%c0_6, %c0_7] : memref<1x128xf32, #tpu.memory_space<vmem>>, vector<1x128xf32>
    %10 = arith.mulf %3, %3 : vector<128x128xf32>
    %cst_8 = arith.constant dense<0.000000e+00> : vector<128xf32>
    %11 = vector.multi_reduction <add>, %10, %cst_8 [0] : vector<128x128xf32> to vector<128xf32>
    %12 = vector.shape_cast %11 : vector<128xf32> to vector<1x128xf32>
    %13 = arith.addf %9, %12 : vector<1x128xf32>
    %c0_9 = arith.constant 0 : index
    %c0_10 = arith.constant 0 : index
    %14 = vector.load %arg3[%c0_9, %c0_10] : memref<1x128xf32, #tpu.memory_space<vmem>>, vector<1x128xf32>
    tpu.vector_store %arg3[%c0_9, %c0_10], %13 {strides = array<i32>} : memref<1x128xf32, #tpu.memory_space<vmem>>, vector<1x128xf32>,
    return
  }
  func.func @transform_0(%arg0: i32) -> (i32, i32) {
    %c0_i32 = arith.constant 0 : i32
    %c0_i32_0 = arith.constant 0 : i32
    return %arg0, %c0_i32 : i32, i32
  }
  func.func @transform_1(%arg0: i32) -> (i32, i32) {
    %c0_i32 = arith.constant 0 : i32
    %c0_i32_0 = arith.constant 0 : i32
    %c0_i32_1 = arith.constant 0 : i32
    return %c0_i32, %c0_i32_0 : i32, i32
  }
  func.func @transform_2(%arg0: i32) -> (i32, i32) {
    %c0_i32 = arith.constant 0 : i32
    %c0_i32_0 = arith.constant 0 : i32
    %c0_i32_1 = arith.constant 0 : i32
    return %c0_i32, %c0_i32_0 : i32, i32
  }
}

module attributes {stable_mosaic.version = 11 : i64} {
  func.func @_bn_affine_kernel(%arg0: i32, %arg1: memref<128x128xf32, #tpu.memory_space<vmem>>, %arg2: memref<1x128xf32, #tpu.memory_space<vmem>>, %arg3: memref<1x128xf32, #tpu.memory_space<vmem>>, %arg4: memref<128x128xf32, #tpu.memory_space<vmem>>) attributes {dimension_semantics = [#tpu.dimension_semantics<parallel>], iteration_bounds = array<i64: 1>, scalar_prefetch = 0 : i64, scratch_operands = 0 : i64, tpu.core_type = #tpu.core_type<tc>, window_params = [{transform_indices = @transform_0, window_bounds = array<i64: 128, 128>}, {pipeline_mode = #tpu.pipeline_mode<synchronous>, transform_indices = @transform_1, window_bounds = array<i64: 1, 128>}, {pipeline_mode = #tpu.pipeline_mode<synchronous>, transform_indices = @transform_2, window_bounds = array<i64: 1, 128>}, {transform_indices = @transform_3, window_bounds = array<i64: 128, 128>}]} {
    %c0 = arith.constant 0 : index
    %c0_0 = arith.constant 0 : index
    %0 = vector.load %arg1[%c0, %c0_0] : memref<128x128xf32, #tpu.memory_space<vmem>>, vector<128x128xf32>
    %c0_1 = arith.constant 0 : index
    %c0_2 = arith.constant 0 : index
    %1 = vector.load %arg2[%c0_1, %c0_2] : memref<1x128xf32, #tpu.memory_space<vmem>>, vector<1x128xf32>
    %2 = vector.broadcast %1 : vector<1x128xf32> to vector<128x128xf32>
    %3 = arith.mulf %0, %2 : vector<128x128xf32>
    %c0_3 = arith.constant 0 : index
    %c0_4 = arith.constant 0 : index
    %4 = vector.load %arg3[%c0_3, %c0_4] : memref<1x128xf32, #tpu.memory_space<vmem>>, vector<1x128xf32>
    %5 = vector.broadcast %4 : vector<1x128xf32> to vector<128x128xf32>
    %6 = arith.addf %3, %5 : vector<128x128xf32>
    %c0_5 = arith.constant 0 : index
    %c0_6 = arith.constant 0 : index
    %7 = vector.load %arg4[%c0_5, %c0_6] : memref<128x128xf32, #tpu.memory_space<vmem>>, vector<128x128xf32>
    tpu.vector_store %arg4[%c0_5, %c0_6], %6 {strides = array<i32>} : memref<128x128xf32, #tpu.memory_space<vmem>>, vector<128x128xf32>,
    return
  }
  func.func @transform_0(%arg0: i32) -> (i32, i32) {
    %c0_i32 = arith.constant 0 : i32
    %c0_i32_0 = arith.constant 0 : i32
    return %arg0, %c0_i32 : i32, i32
  }
  func.func @transform_1(%arg0: i32) -> (i32, i32) {
    %c0_i32 = arith.constant 0 : i32
    %c0_i32_0 = arith.constant 0 : i32
    %c0_i32_1 = arith.constant 0 : i32
    return %c0_i32, %c0_i32_0 : i32, i32
  }
  func.func @transform_2(%arg0: i32) -> (i32, i32) {
    %c0_i32 = arith.constant 0 : i32
    %c0_i32_0 = arith.constant 0 : i32
    %c0_i32_1 = arith.constant 0 : i32
    return %c0_i32, %c0_i32_0 : i32, i32
  }
  func.func @transform_3(%arg0: i32) -> (i32, i32) {
    %c0_i32 = arith.constant 0 : i32
    %c0_i32_0 = arith.constant 0 : i32
    return %arg0, %c0_i32 : i32, i32
  }
}

</mosaic_0001>

<bundles_post_ra>
// kernel: unet_skip_block_forward.4
= control target key start
LH: loop header
LB: loop body
LE: loop exit
PB: predicated region body
PF: predicated region fallthrough
CT: control target
= control target key end

     0   :  { %vm110_vm0 = vcmask 523264   ;;  %s579_s1 = inlined_call_operand.vmem [shape: bf16[64,128], index: 1, kind: input, shape index: {}]   ;;  %s580_s0 = inlined_call_operand.vmem [shape: bf16[128,64], index: 0, kind: input, shape index: {}]   ;;  %s581_s2 = inlined_call_operand.vmem [shape: f32[1,128], index: 2, kind: input, shape index: {}]   ;;  %s582_s3 = inlined_call_operand.vmem [shape: bf16[128,128], index: 3, kind: output, shape index: {}]  }
   0x1   :  { %v476_v0 = vld [vmem:[%s579_s1] sm:$0xff]   ;;  %v477_v1 = vld [vmem:[%s579_s1 + $0x8] sm:$0xff]   ;;  %v478_v2 = vld [vmem:[%s579_s1 + $0x10] sm:$0xff]  }
   0x2   :  { %444 = vmatprep.subr.bf16.mxu0 %v476_v0  ;;  %468 = vmatprep.subr.bf16.mxu1 %v476_v0  ;;  %v480_v3 = vld [vmem:[%s580_s0] sm:$0xff]   ;;  %v479_v5 = vld [vmem:[%s579_s1 + $0x18] sm:$0xff]   ;;  %v482_v6 = vld [vmem:[%s580_s0 + $0x8] sm:$0xff]  }
   0x3   :  { %445 = vmatpush3.bf16.msra.mxu0 %v476_v0  ;;  %472 = vmatpush3.bf16.msra.mxu1 %v476_v0  ;;  %v481_v4 = vld [vmem:[%s580_s0 + $0x20] sm:$0xff]   ;;  %v483_v7 = vld [vmem:[%s580_s0 + $0x28] sm:$0xff]   ;;  %v484_v8 = vld [vmem:[%s580_s0 + $0x10] sm:$0xff]  }
   0x4   :  { %446 = vmatprep.subr.bf16.mxu0 %v477_v1  ;;  %469 = vmatprep.subr.bf16.mxu1 %v477_v1  ;;  %v485_v9 = vld [vmem:[%s580_s0 + $0x30] sm:$0xff]   ;;  %v486_v10 = vld [vmem:[%s580_s0 + $0x18] sm:$0xff]   ;;  %v332_v12 = vld [vmem:[%s581_s2] ss:$0 sm:$0xff] }
   0x5   :  { %452 = vmatprep.mubr.msk.bf16.mxu0 %vm110_vm0, %v480_v3  ;;  %460 = vmatprep.mubr.msk.bf16.mxu1 %vm110_vm0, %v481_v4  ;;  %v487_v11 = vld [vmem:[%s580_s0 + $0x38] sm:$0xff]  }
   0x7   :  { %447 = vmatpush3.bf16.msra.mxu0 %v477_v1  ;;  %473 = vmatpush3.bf16.msra.mxu1 %v477_v1 }
   0x8   :  { %448 = vmatprep.subr.bf16.mxu0 %v478_v2  ;;  %470 = vmatprep.subr.bf16.mxu1 %v478_v2 }
   0xb   :  { %449 = vmatpush3.bf16.msra.mxu0 %v478_v2  ;;  %474 = vmatpush3.bf16.msra.mxu1 %v478_v2 }
   0xc   :  { %450 = vmatprep.subr.bf16.mxu0 %v479_v5  ;;  %471 = vmatprep.subr.bf16.mxu1 %v479_v5 }
   0xf   :  { %451 = vmatpush3.bf16.msra.mxu0 %v479_v5  ;;  %475 = vmatpush3.bf16.msra.mxu1 %v479_v5 }
  0x12   :  { %453 = vmatmul.mubr.msk.bf16.vlgmr.msra.gmra.mrb[0].mxu0 %vm110_vm0, %v482_v6  ;;  %461 = vmatmul.mubr.msk.bf16.vlgmr.msra.gmra.mrb[0].mxu1 %vm110_vm0, %v483_v7 }
  0x13   :  { %456 = vmatprep.mubr.msk.bf16.mxu0 %vm110_vm0, %v484_v8  ;;  %464 = vmatprep.mubr.msk.bf16.mxu1 %vm110_vm0, %v485_v9 }
  0x1a   :  { %457 = vmatmul.mubr.msk.bf16.gmra.mrb[4].mxu0 %vm110_vm0, %v486_v10  ;;  %465 = vmatmul.mubr.msk.bf16.gmra.mrb[4].mxu1 %vm110_vm0, %v487_v11 }
  0xe5   :  { %v454_v13 = vpop.f32.mrb[0].mxu0  ;;  %v462_v14 = vpop.f32.mrb[0].mxu1 }
  0xe6   :  { %v178_v15 = vadd.f32 %v454_v13, %v332_v12  ;;  %v210_v16 = vadd.f32 %v462_v14, %v332_v12  ;;  %v169_v17 = vpop.f32.mrb[1].mxu0  ;;  %v201_v18 = vpop.f32.mrb[1].mxu1 }
  0xe7   :  { %v170_v19 = vadd.f32 %v332_v12, %v169_v17  ;;  %v202_v20 = vadd.f32 %v332_v12, %v201_v18  ;;  %v455_v21 = vpop.f32.mrb[2].mxu0  ;;  %v463_v22 = vpop.f32.mrb[2].mxu1 }
  0xe8   :  { %v181_v23 = vadd.f32 %v455_v21, %v332_v12  ;;  %v213_v24 = vadd.f32 %v463_v22, %v332_v12  ;;  %v172_v25 = vpop.f32.mrb[3].mxu0  ;;  %v204_v26 = vpop.f32.mrb[3].mxu1  ;;  %v234_v29 = vmax.f32 %v178_v15, 0.0  ;;  %v242_v30 = vmax.f32 %v210_v16, 0.0 }
  0xe9   :  { %v173_v27 = vadd.f32 %v332_v12, %v172_v25  ;;  %v205_v28 = vadd.f32 %v332_v12, %v204_v26  ;;  %v232_v33 = vmax.f32 %v170_v19, 0.0  ;;  %v240_v34 = vmax.f32 %v202_v20, 0.0 }
  0xea   :  { %v235_v31 = vmax.f32 %v181_v23, 0.0  ;;  %v243_v32 = vmax.f32 %v213_v24, 0.0 }
  0xeb   :  { %v233_v35 = vmax.f32 %v173_v27, 0.0  ;;  %v241_v36 = vmax.f32 %v205_v28, 0.0 }
  0xec   :  { %v393_v37 = vpack.c.bf16 %v235_v31, %v234_v29  ;;  %v413_v38 = vpack.c.bf16 %v243_v32, %v242_v30 }
  0xed   :  { %v388_v39 = vpack.c.bf16 %v233_v35, %v232_v33  ;;  %v408_v40 = vpack.c.bf16 %v241_v36, %v240_v34  ;;  %v458_v41 = vpop.f32.mrb[4].mxu0  ;;  %v466_v42 = vpop.f32.mrb[4].mxu1 }
  0xee   :  { %425 = vst [vmem:[%s582_s3 + $0x8] sm:$0xff] %v393_v37   ;;  %429 = vst [vmem:[%s582_s3 + $0x28] sm:$0xff] %v413_v38   ;;  %v194_v43 = vadd.f32 %v458_v41, %v332_v12  ;;  %v226_v44 = vadd.f32 %v466_v42, %v332_v12  ;;  %v185_v45 = vpop.f32.mrb[5].mxu0  ;;  %v217_v46 = vpop.f32.mrb[5].mxu1 }
  0xef   :  { %389 = vst [vmem:[%s582_s3] sm:$0xff] %v388_v39   ;;  %428 = vst [vmem:[%s582_s3 + $0x20] sm:$0xff] %v408_v40   ;;  %v186_v47 = vadd.f32 %v332_v12, %v185_v45  ;;  %v218_v48 = vadd.f32 %v332_v12, %v217_v46  ;;  %v459_v49 = vpop.f32.mrb[6].mxu0  ;;  %v467_v50 = vpop.f32.mrb[6].mxu1 }
  0xf0   :  { %v197_v51 = vadd.f32 %v459_v49, %v332_v12  ;;  %v229_v52 = vadd.f32 %v467_v50, %v332_v12  ;;  %v188_v53 = vpop.f32.mrb[7].mxu0  ;;  %v220_v54 = vpop.f32.mrb[7].mxu1  ;;  %v238_v57 = vmax.f32 %v194_v43, 0.0  ;;  %v246_v58 = vmax.f32 %v226_v44, 0.0 }
  0xf1   :  { %v189_v55 = vadd.f32 %v332_v12, %v188_v53  ;;  %v221_v56 = vadd.f32 %v332_v12, %v220_v54  ;;  %v236_v61 = vmax.f32 %v186_v47, 0.0  ;;  %v244_v62 = vmax.f32 %v218_v48, 0.0 }
  0xf2   :  { %v239_v59 = vmax.f32 %v197_v51, 0.0  ;;  %v247_v60 = vmax.f32 %v229_v52, 0.0 }
  0xf3   :  { %v237_v63 = vmax.f32 %v189_v55, 0.0  ;;  %v245_v0 = vmax.f32 %v221_v56, 0.0 }
  0xf4   :  { %v403_v1 = vpack.c.bf16 %v239_v59, %v238_v57  ;;  %v423_v2 = vpack.c.bf16 %v247_v60, %v246_v58 }
  0xf5   :  { %v398_v3 = vpack.c.bf16 %v237_v63, %v236_v61  ;;  %v418_v4 = vpack.c.bf16 %v245_v0, %v244_v62 }
  0xf6   :  { %427 = vst [vmem:[%s582_s3 + $0x18] sm:$0xff] %v403_v1   ;;  %431 = vst [vmem:[%s582_s3 + $0x38] sm:$0xff] %v423_v2  }
  0xf7   :  { %426 = vst [vmem:[%s582_s3 + $0x10] sm:$0xff] %v398_v3   ;;  %430 = vst [vmem:[%s582_s3 + $0x30] sm:$0xff] %v418_v4  }

// kernel: squeeze.34
= control target key start
LH: loop header
LB: loop body
LE: loop exit
PB: predicated region body
PF: predicated region fallthrough
CT: control target
= control target key end

     0   :  { %s37_s8 = smov 116   ;;  %vm7_vm0 = vcmask 31744   ;;  %s38_s9 = smov 120   ;;  %s55_s0 = inlined_call_operand.vmem [shape: f32[16], index: 0, kind: input, shape index: {}]   ;;  %s56_s1 = inlined_call_operand.vmem [shape: f32[4,4], index: 1, kind: output, shape index: {}]  }
   0x1   :  { %v4_v0 = vld [vmem:[%s55_s0] sm:$0x1]  ;;  %s36_s0 = smov 124  }
   0x2   :  { %5 = vst [vmem:[#allocation1] sm:$0x1] %v4_v0 }
   0x9   :  { %v9_v1 = vld [vmem:[#allocation1] sm:$0x1]  }
   0xa   :  { %v21_v2 = vld [vmem:[#allocation1] sm:$0x1]   ;;  %10 = vrot.lane.b32.xlu0 %v9_v1, %s36_s0 }
   0xb   :  { %22 = vrot.lane.b32.xlu1 %v21_v2, %s37_s8  ;;  %v6_v3 = vld [vmem:[#allocation1] sm:$0x1]  }
   0xc   :  { %v15_v4 = vld [vmem:[#allocation1] sm:$0x1]   ;;  %8 = vst.msk [vmem:[#allocation0] sm:$0x1] %vm7_vm0, %v6_v3  }
   0xe   :  { %16 = vrot.lane.b32.xlu0 %v15_v4, %s38_s9 }
  0x7c   :  { %v11_v5 = vpop.permute.xlu0 %10  }
  0x7d   :  { %v23_v6 = vpop.permute.xlu1 %22   ;;  %14 = vst.msk [vmem:[#allocation0 + $0x1] sm:$0x1] %vm7_vm0, %v11_v5  }
  0x7e   :  { %26 = vst.msk [vmem:[#allocation0 + $0x3] sm:$0x1] %vm7_vm0, %v23_v6  }
  0x80   :  { %v17_v7 = vpop.permute.xlu0 %16  }
  0x81   :  { %20 = vst.msk [vmem:[#allocation0 + $0x2] sm:$0x1] %vm7_vm0, %v17_v7  }
  0x88   :  { %v30_v8 = vld [vmem:[#allocation0] sm:$0xf] }
  0x89   :  { %32 = vst [vmem:[%s56_s1] sm:$0xf] %v30_v8 }

// kernel: unet_skip_block_forward.5
= control target key start
LH: loop header
LB: loop body
LE: loop exit
PB: predicated region body
PF: predicated region fallthrough
CT: control target
= control target key end

     0   :  { %vm104_vm0 = vcmask 588800   ;;  %vm129_vm1 = vcmask 1043456   ;;  %s445_s1 = inlined_call_operand.vmem [shape: bf16[72,128], index: 1, kind: input, shape index: {}]   ;;  %s446_s0 = inlined_call_operand.vmem [shape: bf16[128,72], index: 0, kind: input, shape index: {}]   ;;  %s447_s2 = inlined_call_operand.vmem [shape: f32[128,128], index: 2, kind: output, shape index: {}]  }
   0x1   :  { %v322_v0 = vld [vmem:[%s445_s1] sm:$0xff]   ;;  %v323_v1 = vld [vmem:[%s445_s1 + $0x8] sm:$0xff]   ;;  %v324_v2 = vld [vmem:[%s445_s1 + $0x10] sm:$0xff]  }
   0x2   :  { %284 = vmatprep.subr.bf16.mxu0 %v322_v0  ;;  %310 = vmatprep.subr.bf16.mxu1 %v322_v0  ;;  %v327_v3 = vld [vmem:[%s446_s0] sm:$0xff]   ;;  %v325_v5 = vld [vmem:[%s445_s1 + $0x18] sm:$0xff]   ;;  %v329_v8 = vld [vmem:[%s446_s0 + $0x8] sm:$0xff]  }
   0x3   :  { %285 = vmatpush3.bf16.msra.mxu0 %v322_v0  ;;  %315 = vmatpush3.bf16.msra.mxu1 %v322_v0  ;;  %v328_v4 = vld [vmem:[%s446_s0 + $0x20] sm:$0xff]   ;;  %v330_v9 = vld [vmem:[%s446_s0 + $0x28] sm:$0xff]   ;;  %v331_v10 = vld [vmem:[%s446_s0 + $0x10] sm:$0xff]  }
   0x4   :  { %286 = vmatprep.subr.bf16.mxu0 %v323_v1  ;;  %311 = vmatprep.subr.bf16.mxu1 %v323_v1  ;;  %v326_v6 = vld [vmem:[%s445_s1 + $0x20] ss:$0 sps:$4 sm:$0xff]   ;;  %v332_v11 = vld [vmem:[%s446_s0 + $0x30] sm:$0xff]   ;;  %v333_v12 = vld [vmem:[%s446_s0 + $0x18] sm:$0xff]  }
   0x5   :  { %294 = vmatprep.mubr.msk.bf16.mxu0 %vm104_vm0, %v327_v3  ;;  %302 = vmatprep.mubr.msk.bf16.mxu1 %vm104_vm0, %v328_v4  ;;  %v131_v7 = vsel %vm129_vm1, %v326_v6, 0  ;;  %v334_v13 = vld [vmem:[%s446_s0 + $0x38] sm:$0xff]  }
   0x7   :  { %287 = vmatpush3.bf16.msra.mxu0 %v323_v1  ;;  %316 = vmatpush3.bf16.msra.mxu1 %v323_v1 }
   0x8   :  { %288 = vmatprep.subr.bf16.mxu0 %v324_v2  ;;  %312 = vmatprep.subr.bf16.mxu1 %v324_v2 }
   0xb   :  { %289 = vmatpush3.bf16.msra.mxu0 %v324_v2  ;;  %317 = vmatpush3.bf16.msra.mxu1 %v324_v2 }
   0xc   :  { %290 = vmatprep.subr.bf16.mxu0 %v325_v5  ;;  %313 = vmatprep.subr.bf16.mxu1 %v325_v5 }
   0xf   :  { %291 = vmatpush3.bf16.msra.mxu0 %v325_v5  ;;  %318 = vmatpush3.bf16.msra.mxu1 %v325_v5 }
  0x10   :  { %320 = vmatprep.subr.msk.bf16.mxu0 %vm129_vm1, %v326_v6  ;;  %321 = vmatprep.subr.msk.bf16.mxu1 %vm129_vm1, %v326_v6 }
  0x13   :  { %293 = vmatpush3.bf16.msra.mxu0 %v131_v7  ;;  %319 = vmatpush3.bf16.msra.mxu1 %v131_v7 }
  0x16   :  { %295 = vmatmul.mubr.msk.bf16.vlgmr.msra.gmra.mrb[0].mxu0 %vm104_vm0, %v329_v8  ;;  %303 = vmatmul.mubr.msk.bf16.vlgmr.msra.gmra.mrb[0].mxu1 %vm104_vm0, %v330_v9 }
  0x17   :  { %298 = vmatprep.mubr.msk.bf16.mxu0 %vm104_vm0, %v331_v10  ;;  %306 = vmatprep.mubr.msk.bf16.mxu1 %vm104_vm0, %v332_v11 }
  0x1e   :  { %299 = vmatmul.mubr.msk.bf16.gmra.mrb[4].mxu0 %vm104_vm0, %v333_v12  ;;  %307 = vmatmul.mubr.msk.bf16.gmra.mrb[4].mxu1 %vm104_vm0, %v334_v13 }
  0xe9   :  { %v296_v14 = vpop.f32.mrb[0].mxu0  ;;  %v304_v15 = vpop.f32.mrb[0].mxu1 }
  0xea   :  { %232 = vst [vmem:[%s447_s2 + $0x10] sm:$0xff] %v296_v14  ;;  %240 = vst [vmem:[%s447_s2 + $0x50] sm:$0xff] %v304_v15  ;;  %v167_v16 = vpop.f32.mrb[1].mxu0  ;;  %v199_v17 = vpop.f32.mrb[1].mxu1 }
  0xeb   :  { %230 = vst [vmem:[%s447_s2] sm:$0xff] %v167_v16  ;;  %238 = vst [vmem:[%s447_s2 + $0x40] sm:$0xff] %v199_v17  ;;  %v297_v18 = vpop.f32.mrb[2].mxu0  ;;  %v305_v19 = vpop.f32.mrb[2].mxu1 }
  0xec   :  { %233 = vst [vmem:[%s447_s2 + $0x18] sm:$0xff] %v297_v18  ;;  %241 = vst [vmem:[%s447_s2 + $0x58] sm:$0xff] %v305_v19  ;;  %v170_v20 = vpop.f32.mrb[3].mxu0  ;;  %v202_v21 = vpop.f32.mrb[3].mxu1 }
  0xed   :  { %231 = vst [vmem:[%s447_s2 + $0x8] sm:$0xff] %v170_v20  ;;  %239 = vst [vmem:[%s447_s2 + $0x48] sm:$0xff] %v202_v21 }
  0xf1   :  { %v300_v22 = vpop.f32.mrb[4].mxu0  ;;  %v308_v23 = vpop.f32.mrb[4].mxu1 }
  0xf2   :  { %236 = vst [vmem:[%s447_s2 + $0x30] sm:$0xff] %v300_v22  ;;  %244 = vst [vmem:[%s447_s2 + $0x70] sm:$0xff] %v308_v23  ;;  %v183_v24 = vpop.f32.mrb[5].mxu0  ;;  %v215_v25 = vpop.f32.mrb[5].mxu1 }
  0xf3   :  { %234 = vst [vmem:[%s447_s2 + $0x20] sm:$0xff] %v183_v24  ;;  %242 = vst [vmem:[%s447_s2 + $0x60] sm:$0xff] %v215_v25  ;;  %v301_v26 = vpop.f32.mrb[6].mxu0  ;;  %v309_v27 = vpop.f32.mrb[6].mxu1 }
  0xf4   :  { %237 = vst [vmem:[%s447_s2 + $0x38] sm:$0xff] %v301_v26  ;;  %245 = vst [vmem:[%s447_s2 + $0x78] sm:$0xff] %v309_v27  ;;  %v186_v28 = vpop.f32.mrb[7].mxu0  ;;  %v218_v29 = vpop.f32.mrb[7].mxu1 }
  0xf5   :  { %235 = vst [vmem:[%s447_s2 + $0x28] sm:$0xff] %v186_v28  ;;  %243 = vst [vmem:[%s447_s2 + $0x68] sm:$0xff] %v218_v29 }

// kernel: unet_skip_block_forward.6
= control target key start
LH: loop header
LB: loop body
LE: loop exit
PB: predicated region body
PF: predicated region fallthrough
CT: control target
= control target key end

     0   :  { %v105_v0 = vmov 0.0   ;;  %s187_s1 = inlined_call_operand.vmem [shape: f32[1,128], index: 1, kind: output, shape index: {0}]   ;;  %s188_s2 = inlined_call_operand.vmem [shape: f32[1,128], index: 2, kind: output, shape index: {1}]   ;;  %s189_s0 = inlined_call_operand.vmem [shape: f32[128,128], index: 0, kind: input, shape index: {}]  }
   0x1   :  { %14 = vst [vmem:[%s187_s1] sm:$0x1] %v105_v0  ;;  %15 = vst [vmem:[%s188_s2] sm:$0x1] %v105_v0  ;;  %v16_v1 = vld [vmem:[%s189_s0] sm:$0xff]  ;;  %v17_v2 = vld [vmem:[%s189_s0 + $0x8] sm:$0xff] }
   0x2   :  { %v18_v3 = vld [vmem:[%s189_s0 + $0x10] sm:$0xff]  ;;  %v19_v4 = vld [vmem:[%s189_s0 + $0x18] sm:$0xff]  ;;  %v33_v5 = vadd.f32 %v17_v2, %v16_v1  ;;  %v57_v6 = vmul.f32 %v16_v1, %v16_v1  ;;  %v58_v7 = vmul.f32 %v17_v2, %v17_v2  ;;  %v20_v9 = vld [vmem:[%s189_s0 + $0x20] sm:$0xff] }
   0x3   :  { %v59_v8 = vmul.f32 %v18_v3, %v18_v3  ;;  %v60_v11 = vmul.f32 %v19_v4, %v19_v4  ;;  %v21_v13 = vld [vmem:[%s189_s0 + $0x28] sm:$0xff]  ;;  %v61_v15 = vmul.f32 %v20_v9, %v20_v9  ;;  %v22_v17 = vld [vmem:[%s189_s0 + $0x30] sm:$0xff]  ;;  %v23_v21 = vld [vmem:[%s189_s0 + $0x38] sm:$0xff] }
   0x4   :  { %v34_v10 = vadd.f32 %v33_v5, %v18_v3  ;;  %v73_v12 = vadd.f32 %v58_v7, %v57_v6  ;;  %v62_v19 = vmul.f32 %v21_v13, %v21_v13  ;;  %v63_v23 = vmul.f32 %v22_v17, %v22_v17  ;;  %v24_v25 = vld [vmem:[%s189_s0 + $0x40] sm:$0xff]  ;;  %v25_v29 = vld [vmem:[%s189_s0 + $0x48] sm:$0xff]  ;;  %v26_v33 = vld [vmem:[%s189_s0 + $0x50] sm:$0xff] }
   0x5   :  { %v64_v27 = vmul.f32 %v23_v21, %v23_v21  ;;  %v65_v31 = vmul.f32 %v24_v25, %v24_v25  ;;  %v66_v35 = vmul.f32 %v25_v29, %v25_v29  ;;  %v27_v37 = vld [vmem:[%s189_s0 + $0x58] sm:$0xff]  ;;  %v67_v39 = vmul.f32 %v26_v33, %v26_v33  ;;  %v28_v41 = vld [vmem:[%s189_s0 + $0x60] sm:$0xff]  ;;  %v29_v45 = vld [vmem:[%s189_s0 + $0x68] sm:$0xff] }
   0x6   :  { %v35_v14 = vadd.f32 %v34_v10, %v19_v4  ;;  %v74_v16 = vadd.f32 %v73_v12, %v59_v8  ;;  %v68_v43 = vmul.f32 %v27_v37, %v27_v37  ;;  %v69_v47 = vmul.f32 %v28_v41, %v28_v41  ;;  %v30_v49 = vld [vmem:[%s189_s0 + $0x70] sm:$0xff]  ;;  %v31_v53 = vld [vmem:[%s189_s0 + $0x78] sm:$0xff] }
   0x7   :  { %v70_v51 = vmul.f32 %v29_v45, %v29_v45  ;;  %v71_v55 = vmul.f32 %v30_v49, %v30_v49  ;;  %v72_v58 = vmul.f32 %v31_v53, %v31_v53 }
   0x8   :  { %v36_v18 = vadd.f32 %v35_v14, %v20_v9  ;;  %v75_v20 = vadd.f32 %v74_v16, %v60_v11  ;;  %v32_v7 = vld [vmem:[%s187_s1] sm:$0x1] }
   0x9   :  { %v56_v12 = vld [vmem:[%s188_s2] sm:$0x1] }
   0xa   :  { %v37_v22 = vadd.f32 %v36_v18, %v21_v13  ;;  %v76_v24 = vadd.f32 %v75_v20, %v61_v15 }
   0xc   :  { %v38_v26 = vadd.f32 %v37_v22, %v22_v17  ;;  %v77_v28 = vadd.f32 %v76_v24, %v62_v19 }
   0xe   :  { %v39_v30 = vadd.f32 %v38_v26, %v23_v21  ;;  %v78_v32 = vadd.f32 %v77_v28, %v63_v23 }
  0x10   :  { %v40_v34 = vadd.f32 %v39_v30, %v24_v25  ;;  %v79_v36 = vadd.f32 %v78_v32, %v64_v27 }
  0x12   :  { %v41_v38 = vadd.f32 %v40_v34, %v25_v29  ;;  %v80_v40 = vadd.f32 %v79_v36, %v65_v31 }
  0x14   :  { %v42_v42 = vadd.f32 %v41_v38, %v26_v33  ;;  %v81_v44 = vadd.f32 %v80_v40, %v66_v35 }
  0x16   :  { %v43_v46 = vadd.f32 %v42_v42, %v27_v37  ;;  %v82_v48 = vadd.f32 %v81_v44, %v67_v39 }
  0x18   :  { %v44_v50 = vadd.f32 %v43_v46, %v28_v41  ;;  %v83_v52 = vadd.f32 %v82_v48, %v68_v43 }
  0x1a   :  { %v45_v54 = vadd.f32 %v44_v50, %v29_v45  ;;  %v84_v56 = vadd.f32 %v83_v52, %v69_v47 }
  0x1c   :  { %v46_v57 = vadd.f32 %v45_v54, %v30_v49  ;;  %v85_v59 = vadd.f32 %v84_v56, %v70_v51 }
  0x1e   :  { %v47_v60 = vadd.f32 %v46_v57, %v31_v53  ;;  %v86_v61 = vadd.f32 %v85_v59, %v71_v55 }
  0x20   :  { %v48_v62 = vrot.slane %v47_v60, 4  ;;  %v87_v63 = vadd.f32 %v86_v61, %v72_v58 }
  0x22   :  { %v49_v0 = vadd.f32 %v48_v62, %v47_v60  ;;  %v88_v1 = vrot.slane %v87_v63, 4 }
  0x24   :  { %v50_v2 = vrot.slane %v49_v0, 2  ;;  %v89_v3 = vadd.f32 %v88_v1, %v87_v63 }
  0x26   :  { %v51_v4 = vadd.f32 %v50_v2, %v49_v0  ;;  %v90_v5 = vrot.slane %v89_v3, 2 }
  0x28   :  { %v52_v6 = vrot.slane %v51_v4, 1  ;;  %v91_v8 = vadd.f32 %v90_v5, %v89_v3 }
  0x2a   :  { %v53_v9 = vadd.f32 %v52_v6, %v51_v4  ;;  %v92_v10 = vrot.slane %v91_v8, 1 }
  0x2c   :  { %v54_v11 = vadd.f32 %v53_v9, %v32_v7  ;;  %v93_v13 = vadd.f32 %v92_v10, %v91_v8 }
  0x2e   :  { %55 = vst [vmem:[%s187_s1] sm:$0x1] %v54_v11  ;;  %v94_v14 = vadd.f32 %v93_v13, %v56_v12 }
  0x30   :  { %95 = vst [vmem:[%s188_s2] sm:$0x1] %v94_v14 }

// kernel: unet_skip_block_forward.7
= control target key start
LH: loop header
LB: loop body
LE: loop exit
PB: predicated region body
PF: predicated region fallthrough
CT: control target
= control target key end

     0   :  { %s220_s0 = inlined_call_operand.vmem [shape: f32[128,128], index: 0, kind: input, shape index: {}]   ;;  %s221_s1 = inlined_call_operand.vmem [shape: f32[1,128], index: 1, kind: input, shape index: {}]   ;;  %s222_s2 = inlined_call_operand.vmem [shape: f32[1,128], index: 2, kind: input, shape index: {}]   ;;  %s223_s3 = inlined_call_operand.vmem [shape: f32[128,128], index: 3, kind: output, shape index: {}]  }
   0x1   :  { %v14_v0 = vld [vmem:[%s220_s0] sm:$0xff]  ;;  %v15_v4 = vld [vmem:[%s220_s0 + $0x8] sm:$0xff]  ;;  %v16_v5 = vld [vmem:[%s220_s0 + $0x10] sm:$0xff] }
   0x2   :  { %v96_v1 = vld [vmem:[%s221_s1] ss:$0 sm:$0xff]  ;;  %v17_v6 = vld [vmem:[%s220_s0 + $0x18] sm:$0xff]  ;;  %v19_v11 = vld [vmem:[%s220_s0 + $0x28] sm:$0xff] }
   0x3   :  { %v97_v2 = vld [vmem:[%s222_s2] ss:$0 sm:$0xff]  ;;  %v37_v3 = vmul.f32 %v96_v1, %v14_v0  ;;  %v38_v7 = vmul.f32 %v96_v1, %v15_v4  ;;  %v39_v8 = vmul.f32 %v96_v1, %v16_v5  ;;  %v40_v9 = vmul.f32 %v96_v1, %v17_v6  ;;  %v20_v12 = vld [vmem:[%s220_s0 + $0x30] sm:$0xff]  ;;  %v21_v17 = vld [vmem:[%s220_s0 + $0x38] sm:$0xff] }
   0x4   :  { %v18_v10 = vld [vmem:[%s220_s0 + $0x20] sm:$0xff]  ;;  %v42_v15 = vmul.f32 %v96_v1, %v19_v11  ;;  %v43_v16 = vmul.f32 %v96_v1, %v20_v12  ;;  %v23_v19 = vld [vmem:[%s220_s0 + $0x48] sm:$0xff]  ;;  %v44_v23 = vmul.f32 %v96_v1, %v21_v17  ;;  %v24_v24 = vld [vmem:[%s220_s0 + $0x50] sm:$0xff] }
   0x5   :  { %v60_v13 = vadd.f32 %v97_v2, %v37_v3  ;;  %v41_v14 = vmul.f32 %v96_v1, %v18_v10  ;;  %v22_v18 = vld [vmem:[%s220_s0 + $0x40] sm:$0xff]  ;;  %v61_v20 = vadd.f32 %v97_v2, %v38_v7  ;;  %v62_v21 = vadd.f32 %v97_v2, %v39_v8  ;;  %v25_v25 = vld [vmem:[%s220_s0 + $0x58] sm:$0xff]  ;;  %v27_v31 = vld [vmem:[%s220_s0 + $0x68] sm:$0xff] }
   0x6   :  { %v63_v22 = vadd.f32 %v97_v2, %v40_v9  ;;  %v26_v26 = vld [vmem:[%s220_s0 + $0x60] sm:$0xff]  ;;  %v65_v28 = vadd.f32 %v97_v2, %v42_v15  ;;  %v66_v29 = vadd.f32 %v97_v2, %v43_v16  ;;  %v45_v30 = vmul.f32 %v96_v1, %v22_v18  ;;  %v28_v32 = vld [vmem:[%s220_s0 + $0x70] sm:$0xff]  ;;  %v29_v33 = vld [vmem:[%s220_s0 + $0x78] sm:$0xff] }
   0x7   :  { %76 = vst [vmem:[%s223_s3] sm:$0xff] %v60_v13  ;;  %v64_v27 = vadd.f32 %v97_v2, %v41_v14  ;;  %77 = vst [vmem:[%s223_s3 + $0x8] sm:$0xff] %v61_v20  ;;  %v67_v34 = vadd.f32 %v97_v2, %v44_v23  ;;  %v46_v35 = vmul.f32 %v96_v1, %v23_v19 }
   0x8   :  { %78 = vst [vmem:[%s223_s3 + $0x10] sm:$0xff] %v62_v21  ;;  %79 = vst [vmem:[%s223_s3 + $0x18] sm:$0xff] %v63_v22  ;;  %v47_v36 = vmul.f32 %v96_v1, %v24_v24  ;;  %v48_v37 = vmul.f32 %v96_v1, %v25_v25  ;;  %v68_v38 = vadd.f32 %v97_v2, %v45_v30 }
   0x9   :  { %80 = vst [vmem:[%s223_s3 + $0x20] sm:$0xff] %v64_v27  ;;  %81 = vst [vmem:[%s223_s3 + $0x28] sm:$0xff] %v65_v28  ;;  %v49_v39 = vmul.f32 %v96_v1, %v26_v26  ;;  %v50_v40 = vmul.f32 %v96_v1, %v27_v31  ;;  %v51_v41 = vmul.f32 %v96_v1, %v28_v32 }
   0xa   :  { %82 = vst [vmem:[%s223_s3 + $0x30] sm:$0xff] %v66_v29  ;;  %83 = vst [vmem:[%s223_s3 + $0x38] sm:$0xff] %v67_v34  ;;  %v69_v42 = vadd.f32 %v97_v2, %v46_v35  ;;  %v70_v43 = vadd.f32 %v97_v2, %v47_v36  ;;  %v71_v44 = vadd.f32 %v97_v2, %v48_v37 }
   0xb   :  { %v52_v45 = vmul.f32 %v96_v1, %v29_v33  ;;  %84 = vst [vmem:[%s223_s3 + $0x40] sm:$0xff] %v68_v38  ;;  %v72_v46 = vadd.f32 %v97_v2, %v49_v39  ;;  %v73_v47 = vadd.f32 %v97_v2, %v50_v40  ;;  %v74_v48 = vadd.f32 %v97_v2, %v51_v41 }
   0xc   :  { %85 = vst [vmem:[%s223_s3 + $0x48] sm:$0xff] %v69_v42  ;;  %86 = vst [vmem:[%s223_s3 + $0x50] sm:$0xff] %v70_v43 }
   0xd   :  { %87 = vst [vmem:[%s223_s3 + $0x58] sm:$0xff] %v71_v44  ;;  %v75_v49 = vadd.f32 %v97_v2, %v52_v45  ;;  %88 = vst [vmem:[%s223_s3 + $0x60] sm:$0xff] %v72_v46 }
   0xe   :  { %89 = vst [vmem:[%s223_s3 + $0x68] sm:$0xff] %v73_v47  ;;  %90 = vst [vmem:[%s223_s3 + $0x70] sm:$0xff] %v74_v48 }
   0xf   :  { %91 = vst [vmem:[%s223_s3 + $0x78] sm:$0xff] %v75_v49 }

</bundles_post_ra>
